<compile_context>
chip_gen: v6e
topology: v6e:2x2x1
jax: 0.10.0
libtpu: 0.0.40
codegen_flags: <defaults>
</compile_context>

<pallas_src>
import functools

import jax
import jax.numpy as jnp
from jax import lax
from jax.experimental import pallas as pl
from jax.experimental.pallas import tpu as pltpu


def _embed_kernel(patches_ref, w_ref, pos_ref, out_ref):
    # patches_ref: (1, TP, Kp) bf16   w_ref: (Kp, H) bf16   pos_ref: (TP, H) f32
    proj = jnp.dot(patches_ref[0], w_ref[...],
                   preferred_element_type=jnp.float32)        # MXU, f32 accumulate
    out_ref[0] = (proj + pos_ref[...]).astype(out_ref.dtype)  # bias already folded into pos


def _pick_patch_tile(P, max_tile=512):
    """Largest divisor of P <= max_tile, preferring 256-, then 128-, then 8-aligned tiles."""
    if P <= max_tile:
        return P
    for align in (256, 128, 8):
        start = max_tile - (max_tile % align)
        for t in range(start, 0, -align):
            if P % t == 0:
                return t
    return P  # fall back to the full patch dim (always legal as a full block)


def image_embeddings(pixel_values, conv_weight, conv_bias, pos_embed, patch_size,
                     max_patch_tile=512):
    """pixel_values: (B, C, H, W) float32
       conv_weight : (hidden, C, ph, pw)
       conv_bias   : (hidden,)
       pos_embed   : (1, num_patches, hidden)
       returns     : (B, num_patches, hidden) float32
    """
    B, C, H, W = pixel_values.shape
    ph, pw = patch_size
    hp, wp = H // ph, W // pw
    P = hp * wp
    hidden = conv_weight.shape[0]
    K = C * ph * pw
    Kp = ((K + 127) // 128) * 128          # lane-dense contraction dim (zero pad)

    # --- glue: im2col in bf16 (cast + transpose fuse into one HBM pass) -----
    x = pixel_values.astype(jnp.bfloat16).reshape(B, C, hp, ph, wp, pw)
    x = jnp.transpose(x, (0, 2, 4, 1, 3, 5))            # (B, hp, wp, C, ph, pw)
    patches = x.reshape(B, P, K)

    # --- glue: flatten conv weight into (K, hidden) bf16 projection ---------
    w_mat = conv_weight.reshape(hidden, K).T.astype(jnp.bfloat16)

    if Kp != K:
        patches = jnp.pad(patches, ((0, 0), (0, 0), (0, Kp - K)))
        w_mat = jnp.pad(w_mat, ((0, Kp - K), (0, 0)))

    # --- glue: fold conv bias into the (batch-invariant) position table, f32
    pos_b = (pos_embed.reshape(P, hidden).astype(jnp.float32)
             + conv_bias.astype(jnp.float32)[None, :])

    tp = _pick_patch_tile(P, max_patch_tile)
    n_pt = P // tp

    # Grid = (patch tiles, batch), batch innermost: pos/weight block indices
    # are constant while b sweeps, so the pipeline keeps them resident in VMEM
    # (fetched once per patch tile / once total) instead of re-reading per image.
    #
    # NOTE: hidden < 128 (as in this demo) means masked partial stores; real
    # ViT configs (hidden >= 768) are lane-dense.
    out = pl.pallas_call(
        _embed_kernel,
        out_shape=jax.ShapeDtypeStruct((B, P, hidden), jnp.float32),
        grid_spec=pltpu.PrefetchScalarGridSpec(
            num_scalar_prefetch=0,
            grid=(n_pt, B),
            in_specs=[
                pl.BlockSpec((1, tp, Kp), lambda p, b: (b, p, 0)),
                pl.BlockSpec((Kp, hidden), lambda p, b: (0, 0)),
                pl.BlockSpec((tp, hidden), lambda p, b: (p, 0)),
            ],
            out_specs=pl.BlockSpec((1, tp, hidden), lambda p, b: (b, p, 0)),
        ),
        compiler_params=pltpu.CompilerParams(
            dimension_semantics=("parallel", "parallel"),
            vmem_limit_bytes=64 * 1024 * 1024),
    )(patches, w_mat, pos_b)
    return out


def _reference(pixel_values, conv_weight, conv_bias, pos_embed, patch_size):
    # Pure-JAX f32 reference mirroring the PyTorch forward (conv -> flatten -> +pos).
    ph, pw = patch_size
    y = lax.conv_general_dilated(
        pixel_values, conv_weight,
        window_strides=(ph, pw), padding="VALID",
        dimension_numbers=("NCHW", "OIHW", "NCHW"))
    y = y + conv_bias[None, :, None, None]
    B, Hd, hp, wp = y.shape
    y = y.reshape(B, Hd, hp * wp).transpose(0, 2, 1)   # (B, P, hidden)
    return y + pos_embed


if __name__ == "__main__":
    # Small ViT-like config: image 16x16, patch 4, channels 4, hidden 32.
    B, C, IMG, PATCH, HID = 2, 4, 16, 4, 32
    P = (IMG // PATCH) * (IMG // PATCH)          # 16 patches
    K = C * PATCH * PATCH                        # 64

    key = jax.random.PRNGKey(0)
    k_x, k_w, k_b, k_p = jax.random.split(key, 4)
    pixel_values = jax.random.normal(k_x, (B, C, IMG, IMG), dtype=jnp.float32)
    conv_weight = jax.random.normal(k_w, (HID, C, PATCH, PATCH), dtype=jnp.float32) * 0.02
    conv_bias = jax.random.normal(k_b, (HID,), dtype=jnp.float32) * 0.02
    pos_embed = jax.random.normal(k_p, (1, P, HID), dtype=jnp.float32)

    fn = jax.jit(functools.partial(image_embeddings, patch_size=(PATCH, PATCH)))
    out = fn(pixel_values, conv_weight, conv_bias, pos_embed)
    out = jax.block_until_ready(out)

    ref = _reference(pixel_values, conv_weight, conv_bias, pos_embed, (PATCH, PATCH))
    assert out.shape == (B, P, HID)
    # bf16 matmul inputs (f32 accumulation): tolerance relaxed vs f32 reference.
    assert jnp.allclose(out, ref, atol=2e-2, rtol=2e-2), "mismatch vs reference"
    print("KERNEL_OK")
</pallas_src>

<mosaic_0001>
module attributes {stable_mosaic.version = 11 : i64} {
  func.func @_embed_kernel(%arg0: i32, %arg1: i32, %arg2: memref<1x16x128xbf16, #tpu.memory_space<vmem>>, %arg3: memref<128x32xbf16, #tpu.memory_space<vmem>>, %arg4: memref<16x32xf32, #tpu.memory_space<vmem>>, %arg5: memref<1x16x32xf32, #tpu.memory_space<vmem>>) attributes {dimension_semantics = [#tpu.dimension_semantics<parallel>, #tpu.dimension_semantics<parallel>], iteration_bounds = array<i64: 1, 2>, scalar_prefetch = 0 : i64, scratch_operands = 0 : i64, tpu.core_type = #tpu.core_type<tc>, window_params = [{transform_indices = @transform_0, window_bounds = array<i64: 1, 16, 128>}, {pipeline_mode = #tpu.pipeline_mode<synchronous>, transform_indices = @transform_1, window_bounds = array<i64: 128, 32>}, {transform_indices = @transform_2, window_bounds = array<i64: 16, 32>}, {transform_indices = @transform_3, window_bounds = array<i64: 1, 16, 32>}]} {
    %c0 = arith.constant 0 : index
    %c0_0 = arith.constant 0 : index
    %c0_1 = arith.constant 0 : index
    %0 = vector.load %arg2[%c0, %c0_0, %c0_1] : memref<1x16x128xbf16, #tpu.memory_space<vmem>>, vector<1x16x128xbf16>
    %1 = vector.shape_cast %0 : vector<1x16x128xbf16> to vector<16x128xbf16>
    %c0_2 = arith.constant 0 : index
    %c0_3 = arith.constant 0 : index
    %2 = vector.load %arg3[%c0_2, %c0_3] : memref<128x32xbf16, #tpu.memory_space<vmem>>, vector<128x32xbf16>
    %cst = arith.constant dense<0.000000e+00> : vector<16x32xf32>
    %3 = tpu.matmul %1, %2, %cst {dimension_numbers = #tpu.dot_dimension_numbers<[1], [0], [0], [1], [0, 0, 1, 1], [], []>} : vector<16x128xbf16>, vector<128x32xbf16>, vector<16x32xf32> -> vector<16x32xf32>
    %c0_4 = arith.constant 0 : index
    %c0_5 = arith.constant 0 : index
    %4 = vector.load %arg4[%c0_4, %c0_5] : memref<16x32xf32, #tpu.memory_space<vmem>>, vector<16x32xf32>
    %5 = arith.addf %3, %4 : vector<16x32xf32>
    %c0_6 = arith.constant 0 : index
    %c0_7 = arith.constant 0 : index
    %c0_8 = arith.constant 0 : index
    %6 = vector.load %arg5[%c0_6, %c0_7, %c0_8] : memref<1x16x32xf32, #tpu.memory_space<vmem>>, vector<1x16x32xf32>
    %7 = vector.shape_cast %6 : vector<1x16x32xf32> to vector<16x32xf32>
    %8 = vector.shape_cast %5 : vector<16x32xf32> to vector<1x16x32xf32>
    tpu.vector_store %arg5[%c0_6, %c0_7, %c0_8], %8 {strides = array<i32>} : memref<1x16x32xf32, #tpu.memory_space<vmem>>, vector<1x16x32xf32>,
    return
  }
  func.func @transform_0(%arg0: i32, %arg1: i32) -> (i32, i32, i32) {
    %c0_i32 = arith.constant 0 : i32
    %c0_i32_0 = arith.constant 0 : i32
    return %arg1, %arg0, %c0_i32 : i32, i32, i32
  }
  func.func @transform_1(%arg0: i32, %arg1: i32) -> (i32, i32) {
    %c0_i32 = arith.constant 0 : i32
    %c0_i32_0 = arith.constant 0 : i32
    %c0_i32_1 = arith.constant 0 : i32
    return %c0_i32, %c0_i32_0 : i32, i32
  }
  func.func @transform_2(%arg0: i32, %arg1: i32) -> (i32, i32) {
    %c0_i32 = arith.constant 0 : i32
    %c0_i32_0 = arith.constant 0 : i32
    return %arg0, %c0_i32 : i32, i32
  }
  func.func @transform_3(%arg0: i32, %arg1: i32) -> (i32, i32, i32) {
    %c0_i32 = arith.constant 0 : i32
    %c0_i32_0 = arith.constant 0 : i32
    return %arg1, %arg0, %c0_i32 : i32, i32, i32
  }
}

</mosaic_0001>

<bundles_post_ra>
// kernel: image_embeddings.1
= control target key start
LH: loop header
LB: loop body
LE: loop exit
PB: predicated region body
PF: predicated region fallthrough
CT: control target
= control target key end

     0   :  { %8 = vsyncpa [#allocation3], 0  ;;  %s820_s0 = inlined_call_operand.vmem [shape: bf16[2,16,128], index: 0, kind: input, shape index: {}]   ;;  %s821_s1 = inlined_call_operand.vmem [shape: bf16[128,32], index: 1, kind: input, shape index: {}]   ;;  %s822_s2 = inlined_call_operand.vmem [shape: f32[16,32], index: 2, kind: input, shape index: {}]   ;;  %s823_s3 = inlined_call_operand.hbm [shape: f32[2,16,32], index: 3, kind: output, shape index: {}]  }
   0x1   :  { %10 = vsyncpa [#allocation3 + $0x1], 0  ;;  %s676_s12 = smov 0   ;;  %s678_s13 = smov 0  }
   0x2   :  { %s680_s14 = smov 0   ;;  %s682_s15 = smov 0  }
   0x3   :  { %s684_s16 = smov 0   ;;  %s686_s17 = smov 0  }
   0x4 LB: > { %s451_s18 = sadd.s32 4294967295, %s649_s17   ;;  %s452_s19 = sadd.s32 4294967294, %s649_s17   ;;  %s649_s17 = sphi %s686_s17, %s16_s17   ;;  %s645_s16 = sphi %s684_s16, %s830_s16   ;;  %s641_s15 = sphi %s682_s15, %s829_s15   ;;  %s637_s14 = sphi %s680_s14, %s828_s14   ;;  %s633_s13 = sphi %s678_s13, %s827_s13   ;;  %s629_s12 = sphi %s676_s12, %s826_s12  }
   0x5   : > { %s25_s20 = sadd.s32 1, %s645_s16  ;;  %s112_s21 = sadd.s32 1, %s637_s14 }
   0x6   : > { %p26_p0 = scmp.ge.s32.totalorder %s25_s20, 2  ;;  %p122_p1 = scmp.ne.s32.totalorder %s637_s14, %s633_s13 }
   0x7   : > { %p123_p2 = scmp.eq.s32.totalorder %s451_s18, 1  ;;  %p128_p3 = scmp.ne.s32.totalorder %s633_s13, %s629_s12 }
   0x8   : > { %s832_s20 = smov (%p26_p0, %s25_s20), 0  ;;  %p129_p5 = scmp.eq.s32.totalorder %s452_s19, 1 }
   0x9   : > { %p716_p4 = por %p123_p2, %p122_p1  ;;  %s107_s23 = ssub.s32 %s645_s16, %s832_s20 }
   0xa   : > { %p456_p6 = scmp.ge.s32.totalorder %s649_s17, 1  ;;  %p110_p7 = scmp.eq.s32.totalorder %s107_s23, 0 }
   0xb   : > { %p723_p8 = por %p129_p5, %p128_p3  ;;  %p172_p9 = scmp.lt.s32.totalorder %s649_s17, 3 }
   0xc   : > { %s729_s25 = scalar_select %p110_p7, %s637_s14, %s112_s21  }
   0xd   : > { %p173_p10 = pnand %p456_p6, %p172_p9 }
   0xe   : > { %p206_p11 = scmp.lt.s32.totalorder (!%p173_p10), %s641_s15, 1  ;;  %s475_s10 = sshll.u32 (!%p173_p10), %s641_s15, 8 }
   0xf   : > { %176 = sbr.rel (%p173_p10) target bundleno = 266 (0x10a), region = 32  ;;  %s773_s21 = scalar_lea.hbm (!%p173_p10), %s823_s3, %s475_s10 }
  0x10   : > { %s653_s26 = smov (!%p173_p10), [#allocation2]  }
  0x11   : > { %s577_s27 = sshll.u32 (!%p173_p10), %s653_s26, 4  ;;  %s578_s27 = int_to_ptr.vmem [resolvable:$false] %s577_s27 }
  0x12   : > { %s579_s28 = scalar_lea.vmem (!%p173_p10), %s578_s27, 512 }
  0x14   : > { %v564_v0 = vld [vmem:[%s821_s1 + $0x38] sm:$0xff]   ;;  %v651_v1 = vmov 0.0   ;;  %v565_v2 = vld [vmem:[%s821_s1 + $0x30] sm:$0xff]   ;;  %vm652_vm0 = vmmov 0   ;;  %s207_s30 = scalar_select %p206_p11, %s641_s15, 1  ;;  %v566_v3 = vld [vmem:[%s821_s1 + $0x28] sm:$0xff]  }
  0x15   : > { %485 = vmatprep.subr.bf16.mxu0 %v651_v1  ;;  %501 = vmatprep.mubr.msk.bf16.mxu0 %vm652_vm0, %v651_v1  ;;  %v567_v4 = vld [vmem:[%s821_s1 + $0x20] sm:$0xff]   ;;  %v568_v5 = vld [vmem:[%s821_s1 + $0x18] sm:$0xff]   ;;  %v569_v6 = vld [vmem:[%s821_s1 + $0x10] sm:$0xff]   ;;  %vm338_vm1 = vcmask 261120  }
  0x16   : > { %486 = vmatpush3.bf16.msra.mxu0 %v564_v0  ;;  %s474_s6 = sshll.u32 %s207_s30, 3  ;;  %v570_v7 = vld [vmem:[%s821_s1 + $0x8] sm:$0xff]   ;;  %v571_v8 = vld [vmem:[%s821_s1] sm:$0xff]   ;;  %s202_s30 = sand.u32 1, %s633_s13  }
  0x17   : > { %487 = vmatprep.subr.bf16.mxu0 %v651_v1  ;;  %s213_s9 = scalar_lea.vmem %s820_s0, %s474_s6  ;;  %s457_s4 = sshll.u32 %s202_s30, 4  ;;  %v241_v10 = vld [vmem:[%s822_s2] sm:$0xff]  ;;  %v242_v14 = vld [vmem:[%s822_s2 + $0x8] sm:$0xff] }
  0x18   : > { %v572_v9 = vld [vmem:[%s213_s9] sm:$0xff]   ;;  %s204_s7 = scalar_lea.vmem [#allocation2], %s457_s4  ;;  %s775_s15 = scalar_lea.sflag [#allocation3], %s202_s30 }
  0x19   : > { %s357_s8 = sshll.u32 %s204_s7, 4  ;;  %s768_s8 = int_to_ptr.vmem [resolvable:$true] %s357_s8 }
  0x1a   : > { %488 = vmatpush3.bf16.msra.mxu0 %v565_v2  ;;  %s573_s23 = scalar_lea.vmem %s768_s8, 256  ;;  %p580_p1 = scmp.lt.s32.totalorder %s768_s8, %s578_s27 }
  0x1b   : > { %489 = vmatprep.subr.bf16.mxu0 %v651_v1  ;;  %p574_p12 = scmp.ne.s32.totalorder %s768_s8, %s573_s23  ;;  %p581_p2 = scmp.lt.s32.totalorder %s579_s28, %s573_s23 }
  0x1d   : > { %p575_p13 = pnand %p574_p12, %p716_p4  ;;  %p582_p3 = por %p581_p2, %p580_p1 }
  0x1e   : > { %490 = vmatpush3.bf16.msra.mxu0 %v566_v3 }
  0x1f   : > { %491 = vmatprep.subr.bf16.mxu0 %v651_v1  ;;  %p576_p0 = pneg %p575_p13 }
  0x21   : > { %p583_p5 = pnand %p582_p3, %p576_p0 }
  0x22   : > { %492 = vmatpush3.bf16.msra.mxu0 %v567_v4 }
  0x23   : > { %493 = vmatprep.subr.bf16.mxu0 %v651_v1 }
  0x26   : > { %494 = vmatpush3.bf16.msra.mxu0 %v568_v5 }
  0x27   : > { %495 = vmatprep.subr.bf16.mxu0 %v651_v1 }
  0x2a   : > { %496 = vmatpush3.bf16.msra.mxu0 %v569_v6 }
  0x2b   : > { %497 = vmatprep.subr.bf16.mxu0 %v651_v1 }
  0x2e   : > { %498 = vmatpush3.bf16.msra.mxu0 %v570_v7 }
  0x2f   : > { %499 = vmatprep.subr.bf16.mxu0 %v651_v1 }
  0x32   : > { %500 = vmatpush3.bf16.msra.mxu0 %v571_v8 }
  0x35   : > { %502 = vmatmul.mubr.bf16.vlgmr.msra.gmra.mxu0 %v572_v9 }
  0xf5   : > { %v331_v11 = vpop.f32.mrf.mxu0 }
  0xf6   : > { %v332_v12 = vadd.f32 %v331_v11, %v241_v10 }
  0xf7   : > { %v503_v13 = vpop.f32.mrf.mxu0 }
  0xf8   : > { %339 = vst.msk [vmem:[%s204_s7] sm:$0xff] %vm338_vm1, %v332_v12 }
  0xf9   : > { %v334_v15 = vpop.f32.mrf.mxu0 }
  0xfa   : > { %v335_v16 = vadd.f32 %v334_v15, %v242_v14 }
  0xfb   : > { %v504_v17 = vpop.f32.mrf.mxu0 }
  0xfc   : > { %340 = vst.msk [vmem:[%s204_s7 + $0x8] sm:$0xff] %vm338_vm1, %v335_v16 }
  0xfd   : > { %586 = shalt.err (!%p583_p5)
}
  0xfe   : > { %s587_s29 = scalar_lea.hbm %s773_s21, 256  ;;  %s591_s5 = scalar_lea.hbm %s823_s3, 512 }
  0xff   : > { %p588_p6 = scmp.ne.s32.totalorder %s773_s21, %s587_s29  ;;  %p592_p10 = scmp.lt.s32.totalorder %s773_s21, %s823_s3 }
 0x100   : > { %p593_p11 = scmp.lt.s32.totalorder %s591_s5, %s587_s29 }
 0x101   : > { %p589_p7 = pnand %p588_p6, %p716_p4 }
 0x102   : > { %p594_p12 = por %p593_p11, %p592_p10 }
 0x103   : > { %p590_p9 = pneg %p589_p7 }
 0x105   : > { %p595_p13 = pnand %p594_p12, %p590_p9 }
 0x107   : > { %598 = shalt.err (!%p595_p13)
}
 0x108   : > { %s654_s10 = smov 128   ;;  %s655_s11 = smov 8  }
 0x109   : > { %505 = dma.vmem_to_hbm [thread:$0]  (%p716_p4), %s768_s8, 256, %s773_s21, %s775_s15, %s654_s10, %s654_s10, %s655_s11  }
 0x10a PF: > { %p511_p0 = scmp.ge.s32.totalorder %s649_s17, 2  ;;  %s372_s18 = sand.u32 1, %s629_s12  }
 0x10b   : > { %s373_s9 = scalar_lea.sflag [#allocation3], %s372_s18 }
 0x10c   : > { %p508_p1 = pnand %p511_p0, %p723_p8 }
 0x10e   : > { %p509_p2 = pneg %p508_p1 }
 0x110   : > { %624 = dma.done.wait (%p509_p2), %s373_s9, 256  }
 0x111   : > { %626 = vsyncadd (%p509_p2), %s373_s9, 4294967040  ;;  %s16_s17 = sadd.s32 1, %s649_s17   ;;  %s826_s12 = smov %s633_s13 }
 0x112   : > { %p13_p3 = scmp.ge.s32.totalorder %s16_s17, 4   ;;  %s827_s13 = smov %s637_s14 }
 0x113   : > { %s828_s14 = smov %s729_s25  ;;  %s829_s15 = smov %s645_s16 }
 0x114   : > { %s830_s16 = smov %s832_s20  ;;  %15 = sbr.rel (!%p13_p3) target bundleno = 4 (0x4), region = 70 }
 0x119   :  { %378 = vsyncpa [#allocation3], 1 }
 0x11a   :  { %380 = vsyncpa [#allocation3 + $0x1], 1 }

</bundles_post_ra>
